<compile_context>
chip_gen: v7x
topology: tpu7x:2x2x1
jax: 0.10.0
libtpu: 0.0.40
codegen_flags: <defaults>
</compile_context>

<pallas_src>
import jax
import jax.numpy as jnp
from jax.experimental import pallas as pl
from jax.experimental.pallas import tpu as pltpu


def _round_up(x, m):
    return ((x + m - 1) // m) * m


def _sinusoidal_embedding(t, E):
    """Standard sinusoidal time embedding, [B] -> [B, E]."""
    half = E // 2
    freqs = jnp.exp(-jnp.log(10000.0) * jnp.arange(half, dtype=jnp.float32) / half)
    ang = t.astype(jnp.float32)[:, None] * freqs[None, :]
    return jnp.concatenate([jnp.sin(ang), jnp.cos(ang)], axis=-1)


def score_kernel(x_ref, tb_ref,
                 w_rep_ref, b_rep_ref,
                 w_h1_ref, b_h1_ref,
                 w_h2_ref, b_h2_ref,
                 rep_ref, scores_ref):
    # x streamed as f32, cast to bf16 in-register (no wrapper HBM pass over x).
    x = x_ref[0].astype(jnp.bfloat16)                               # [TN, F]

    # --- representation: Linear + ReLU (bf16 operands, f32 accumulation) ----
    rep = jnp.dot(x, w_rep_ref[...],
                  preferred_element_type=jnp.float32) + b_rep_ref[...]
    rep = jnp.maximum(rep, 0.0)                                     # [TN, H] f32

    # --- TimeConditioning: per-graph bias broadcast over this node tile -----
    rep = rep + tb_ref[0]                                           # [1, H] -> [TN, H]

    rep_bf = rep.astype(jnp.bfloat16)
    rep_ref[0] = rep_bf                                             # bf16 writeback

    # --- head: 2-layer MLP -> per-node scores (O zero-padded to OPAD lanes) -
    h = jnp.dot(rep_bf, w_h1_ref[...],
                preferred_element_type=jnp.float32) + b_h1_ref[...]
    h = jnp.maximum(h, 0.0)
    scores_ref[0] = jnp.dot(h.astype(jnp.bfloat16), w_h2_ref[...],
                            preferred_element_type=jnp.float32) + b_h2_ref[...]


def score_model_forward(x, t_graph, params, *, tn_max=2048):
    """x: [B, N, F] per-node features, t_graph: [B] per-graph diffusion time."""
    B, N, F = x.shape
    H = params["w_rep"].shape[1]
    O = params["o_dim"]
    OPAD = params["w_h2"].shape[1]
    E = params["w_t"].shape[0]

    # Per-graph time-conditioning bias (tiny [B,E]x[E,H] matmul) — hoisted to the
    # wrapper; the kernel only broadcast-adds its graph's [1, H] row.
    temb = _sinusoidal_embedding(t_graph, E)                         # [B, E]
    tbias = (temb @ params["w_t"] + params["b_t"]).astype(jnp.float32)
    tbias = tbias.reshape(B, 1, H)                                   # [B, 1, H]

    # Node tiling: balance the node axis into the fewest tiles of size <= tn_max,
    # round the tile to a multiple of 16 (bf16 sublane packing), and keep >= 2
    # total grid steps whenever possible so megacore (v7x) can shard.
    n_tiles = max(1, pl.cdiv(N, tn_max))
    if B * n_tiles < 2 and N >= 32:
        n_tiles = 2
    tn = _round_up(max(16, pl.cdiv(N, n_tiles)), 16)
    n_pad = n_tiles * tn
    if n_pad != N:
        x = jnp.pad(x, ((0, 0), (0, n_pad - N), (0, 0)))

    # Weights as bf16 MXU operands (tiny, one-time cast); biases stay f32.
    w_rep = params["w_rep"].astype(jnp.bfloat16)
    w_h1 = params["w_h1"].astype(jnp.bfloat16)
    w_h2 = params["w_h2"].astype(jnp.bfloat16)
    b_rep, b_h1, b_h2 = params["b_rep"], params["b_h1"], params["b_h2"]

    grid = (B, n_tiles)

    in_specs = [
        pl.BlockSpec((1, tn, F), lambda b, j: (b, j, 0)),       # x tile (f32)
        pl.BlockSpec((1, 1, H), lambda b, j: (b, 0, 0)),        # per-graph time bias
        pl.BlockSpec((F, H), lambda b, j: (0, 0)),              # w_rep (VMEM-resident)
        pl.BlockSpec((1, H), lambda b, j: (0, 0)),              # b_rep
        pl.BlockSpec((H, H), lambda b, j: (0, 0)),              # w_h1
        pl.BlockSpec((1, H), lambda b, j: (0, 0)),              # b_h1
        pl.BlockSpec((H, OPAD), lambda b, j: (0, 0)),           # w_h2 (O padded to 8)
        pl.BlockSpec((1, OPAD), lambda b, j: (0, 0)),           # b_h2
    ]
    out_specs = (
        pl.BlockSpec((1, tn, H), lambda b, j: (b, j, 0)),       # representation (bf16)
        pl.BlockSpec((1, tn, OPAD), lambda b, j: (b, j, 0)),    # narrow padded scores
    )
    out_shapes = (
        jax.ShapeDtypeStruct((B, n_pad, H), jnp.bfloat16),
        jax.ShapeDtypeStruct((B, n_pad, OPAD), jnp.float32),
    )

    # Advisory cost estimate for XLA's scheduler.
    M = B * n_pad
    flops = 2 * M * (F * H + H * H + H * OPAD)
    weight_bytes = ((w_rep.size + w_h1.size + w_h2.size) * 2
                    + (b_rep.size + b_h1.size + b_h2.size) * 4)
    bytes_accessed = (x.size * 4 + tbias.size * 4 + int(weight_bytes)
                      + M * H * 2 + M * OPAD * 4)
    cost = pl.CostEstimate(flops=int(flops), transcendentals=0,
                           bytes_accessed=int(bytes_accessed))

    # VMEM budget: double-buffered per-tile I/O + (double-buffered) weights + slack.
    # Cap well below v7x's 64 MiB/TC physical VMEM to leave compiler headroom.
    per_tile = tn * (F * 4 + H * 2 + OPAD * 4) + H * 4
    vmem_limit = min(40 * 1024 * 1024,
                     2 * per_tile + 2 * int(weight_bytes) + 8 * 1024 * 1024)

    rep, scores = pl.pallas_call(
        score_kernel,
        out_shape=out_shapes,
        grid=grid,
        in_specs=in_specs,
        out_specs=out_specs,
        compiler_params=pltpu.CompilerParams(
            dimension_semantics=("parallel", "parallel"),
            vmem_limit_bytes=int(vmem_limit)),
        cost_estimate=cost,
    )(x, tbias, w_rep, b_rep, w_h1, b_h1, w_h2, b_h2)

    # translator.add_representation / add_scores: strip node padding and the
    # small lane padding of the score head.
    return {"representation": rep[:, :N, :],
            "scores": {"positions": scores[:, :N, :O]}}


def init_params(key, F, H, E, O, opad=8):
    ks = jax.random.split(key, 4)
    w_h2 = jax.random.normal(ks[3], (H, O), jnp.float32) * 0.1
    # Zero-pad the score head only to a small full-dim width (masked stores are
    # fine here: the kernel is HBM-bound, not store-slot-bound).
    w_h2_pad = jnp.zeros((H, opad), jnp.float32).at[:, :O].set(w_h2)
    b_h2_pad = jnp.zeros((1, opad), jnp.float32)
    return {
        "o_dim": O,
        "w_rep": jax.random.normal(ks[0], (F, H), jnp.float32) * 0.1,
        "b_rep": jnp.zeros((1, H), jnp.float32),
        "w_t":   jax.random.normal(ks[1], (E, H), jnp.float32) * 0.1,
        "b_t":   jnp.zeros((1, H), jnp.float32),
        "w_h1":  jax.random.normal(ks[2], (H, H), jnp.float32) * 0.1,
        "b_h1":  jnp.zeros((1, H), jnp.float32),
        "w_h2":  w_h2_pad,
        "b_h2":  b_h2_pad,
    }


def reference_forward(x, t_graph, params):
    """Pure-JAX f32 reference with identical semantics."""
    E = params["w_t"].shape[0]
    temb = _sinusoidal_embedding(t_graph, E)
    tbias = temb @ params["w_t"] + params["b_t"]                      # [B, H]
    rep = jnp.maximum(jnp.einsum("bnf,fh->bnh", x, params["w_rep"])
                      + params["b_rep"], 0.0)
    rep = rep + tbias[:, None, :]
    h = jnp.maximum(jnp.einsum("bnh,hk->bnk", rep, params["w_h1"])
                    + params["b_h1"], 0.0)
    scores = jnp.einsum("bnk,ko->bno", h, params["w_h2"]) + params["b_h2"]
    return rep, scores[..., :params["o_dim"]]


if __name__ == "__main__":
    # Small but kernel-exercising sizes: batch=2 graphs, 32 nodes each,
    # F=32 input features, H=128 hidden, E=32 time-embedding dims, O=3 scores.
    B, N, F, H, E, O = 2, 32, 32, 128, 32, 3
    key = jax.random.PRNGKey(0)
    k_x, k_t, k_p = jax.random.split(key, 3)

    x = jax.random.normal(k_x, (B, N, F), jnp.float32)   # per-node features
    t = jax.random.uniform(k_t, (B,), jnp.float32)       # per-graph diffusion time
    params = init_params(k_p, F, H, E, O)

    out = score_model_forward(x, t, params)
    rep = out["representation"]
    scores = out["scores"]["positions"]
    jax.block_until_ready(scores)

    assert rep.shape == (B, N, H) and scores.shape == (B, N, O)

    rep_ref, scores_ref = reference_forward(x, t, params)
    assert jnp.allclose(rep.astype(jnp.float32), rep_ref, rtol=5e-2, atol=5e-2)
    assert jnp.allclose(scores, scores_ref, rtol=5e-2, atol=5e-2)

    # TODO(synk): agedi's abstract Translator/Head/Batch interfaces are graph-object
    # plumbing with no tensor semantics; only the concrete tensor path
    # (representation, time conditioning, score head) is kernelized.
    print("KERNEL_OK")
</pallas_src>

<mosaic_0001>
module attributes {stable_mosaic.version = 11 : i64} {
  func.func @score_kernel(%arg0: i32, %arg1: i32, %arg2: memref<1x32x32xf32, #tpu.memory_space<vmem>>, %arg3: memref<1x1x128xf32, #tpu.memory_space<vmem>>, %arg4: memref<32x128xbf16, #tpu.memory_space<vmem>>, %arg5: memref<1x128xf32, #tpu.memory_space<vmem>>, %arg6: memref<128x128xbf16, #tpu.memory_space<vmem>>, %arg7: memref<1x128xf32, #tpu.memory_space<vmem>>, %arg8: memref<128x8xbf16, #tpu.memory_space<vmem>>, %arg9: memref<1x8xf32, #tpu.memory_space<vmem>>, %arg10: memref<1x32x128xbf16, #tpu.memory_space<vmem>>, %arg11: memref<1x32x8xf32, #tpu.memory_space<vmem>>) attributes {dimension_semantics = [#tpu.dimension_semantics<parallel>, #tpu.dimension_semantics<parallel>], iteration_bounds = array<i64: 2, 1>, scalar_prefetch = 0 : i64, scratch_operands = 0 : i64, tpu.core_type = #tpu.core_type<tc>, window_params = [{transform_indices = @transform_0, window_bounds = array<i64: 1, 32, 32>}, {transform_indices = @transform_1, window_bounds = array<i64: 1, 1, 128>}, {pipeline_mode = #tpu.pipeline_mode<synchronous>, transform_indices = @transform_2, window_bounds = array<i64: 32, 128>}, {pipeline_mode = #tpu.pipeline_mode<synchronous>, transform_indices = @transform_3, window_bounds = array<i64: 1, 128>}, {pipeline_mode = #tpu.pipeline_mode<synchronous>, transform_indices = @transform_4, window_bounds = array<i64: 128, 128>}, {pipeline_mode = #tpu.pipeline_mode<synchronous>, transform_indices = @transform_5, window_bounds = array<i64: 1, 128>}, {pipeline_mode = #tpu.pipeline_mode<synchronous>, transform_indices = @transform_6, window_bounds = array<i64: 128, 8>}, {pipeline_mode = #tpu.pipeline_mode<synchronous>, transform_indices = @transform_7, window_bounds = array<i64: 1, 8>}, {transform_indices = @transform_8, window_bounds = array<i64: 1, 32, 128>}, {transform_indices = @transform_9, window_bounds = array<i64: 1, 32, 8>}]} {
    %c0 = arith.constant 0 : index
    %c0_0 = arith.constant 0 : index
    %c0_1 = arith.constant 0 : index
    %0 = vector.load %arg2[%c0, %c0_0, %c0_1] : memref<1x32x32xf32, #tpu.memory_space<vmem>>, vector<1x32x32xf32>
    %1 = vector.shape_cast %0 : vector<1x32x32xf32> to vector<32x32xf32>
    %2 = arith.truncf %1 : vector<32x32xf32> to vector<32x32xbf16>
    %c0_2 = arith.constant 0 : index
    %c0_3 = arith.constant 0 : index
    %3 = vector.load %arg4[%c0_2, %c0_3] : memref<32x128xbf16, #tpu.memory_space<vmem>>, vector<32x128xbf16>
    %cst = arith.constant dense<0.000000e+00> : vector<32x128xf32>
    %4 = tpu.matmul %2, %3, %cst {dimension_numbers = #tpu.dot_dimension_numbers<[1], [0], [0], [1], [0, 0, 1, 1], [], []>} : vector<32x32xbf16>, vector<32x128xbf16>, vector<32x128xf32> -> vector<32x128xf32>
    %c0_4 = arith.constant 0 : index
    %c0_5 = arith.constant 0 : index
    %5 = vector.load %arg5[%c0_4, %c0_5] : memref<1x128xf32, #tpu.memory_space<vmem>>, vector<1x128xf32>
    %6 = vector.broadcast %5 : vector<1x128xf32> to vector<32x128xf32>
    %7 = arith.addf %4, %6 : vector<32x128xf32>
    %cst_6 = arith.constant 0.000000e+00 : f32
    %8 = vector.broadcast %cst_6 : f32 to vector<32x128xf32>
    %9 = arith.maximumf %7, %8 : vector<32x128xf32>
    %c0_7 = arith.constant 0 : index
    %c0_8 = arith.constant 0 : index
    %c0_9 = arith.constant 0 : index
    %10 = vector.load %arg3[%c0_7, %c0_8, %c0_9] : memref<1x1x128xf32, #tpu.memory_space<vmem>>, vector<1x1x128xf32>
    %11 = vector.shape_cast %10 : vector<1x1x128xf32> to vector<1x128xf32>
    %12 = vector.broadcast %11 : vector<1x128xf32> to vector<32x128xf32>
    %13 = arith.addf %9, %12 : vector<32x128xf32>
    %14 = arith.truncf %13 : vector<32x128xf32> to vector<32x128xbf16>
    %c0_10 = arith.constant 0 : index
    %c0_11 = arith.constant 0 : index
    %c0_12 = arith.constant 0 : index
    %15 = vector.load %arg10[%c0_10, %c0_11, %c0_12] : memref<1x32x128xbf16, #tpu.memory_space<vmem>>, vector<1x32x128xbf16>
    %16 = vector.shape_cast %15 : vector<1x32x128xbf16> to vector<32x128xbf16>
    %17 = vector.shape_cast %14 : vector<32x128xbf16> to vector<1x32x128xbf16>
    tpu.vector_store %arg10[%c0_10, %c0_11, %c0_12], %17 {strides = array<i32>} : memref<1x32x128xbf16, #tpu.memory_space<vmem>>, vector<1x32x128xbf16>,
    %c0_13 = arith.constant 0 : index
    %c0_14 = arith.constant 0 : index
    %18 = vector.load %arg6[%c0_13, %c0_14] : memref<128x128xbf16, #tpu.memory_space<vmem>>, vector<128x128xbf16>
    %cst_15 = arith.constant dense<0.000000e+00> : vector<32x128xf32>
    %19 = tpu.matmul %14, %18, %cst_15 {dimension_numbers = #tpu.dot_dimension_numbers<[1], [0], [0], [1], [0, 0, 1, 1], [], []>} : vector<32x128xbf16>, vector<128x128xbf16>, vector<32x128xf32> -> vector<32x128xf32>
    %c0_16 = arith.constant 0 : index
    %c0_17 = arith.constant 0 : index
    %20 = vector.load %arg7[%c0_16, %c0_17] : memref<1x128xf32, #tpu.memory_space<vmem>>, vector<1x128xf32>
    %21 = vector.broadcast %20 : vector<1x128xf32> to vector<32x128xf32>
    %22 = arith.addf %19, %21 : vector<32x128xf32>
    %cst_18 = arith.constant 0.000000e+00 : f32
    %23 = vector.broadcast %cst_18 : f32 to vector<32x128xf32>
    %24 = arith.maximumf %22, %23 : vector<32x128xf32>
    %25 = arith.truncf %24 : vector<32x128xf32> to vector<32x128xbf16>
    %c0_19 = arith.constant 0 : index
    %c0_20 = arith.constant 0 : index
    %26 = vector.load %arg8[%c0_19, %c0_20] : memref<128x8xbf16, #tpu.memory_space<vmem>>, vector<128x8xbf16>
    %cst_21 = arith.constant dense<0.000000e+00> : vector<32x8xf32>
    %27 = tpu.matmul %25, %26, %cst_21 {dimension_numbers = #tpu.dot_dimension_numbers<[1], [0], [0], [1], [0, 0, 1, 1], [], []>} : vector<32x128xbf16>, vector<128x8xbf16>, vector<32x8xf32> -> vector<32x8xf32>
    %c0_22 = arith.constant 0 : index
    %c0_23 = arith.constant 0 : index
    %28 = vector.load %arg9[%c0_22, %c0_23] : memref<1x8xf32, #tpu.memory_space<vmem>>, vector<1x8xf32>
    %29 = vector.broadcast %28 : vector<1x8xf32> to vector<32x8xf32>
    %30 = arith.addf %27, %29 : vector<32x8xf32>
    %c0_24 = arith.constant 0 : index
    %c0_25 = arith.constant 0 : index
    %c0_26 = arith.constant 0 : index
    %31 = vector.load %arg11[%c0_24, %c0_25, %c0_26] : memref<1x32x8xf32, #tpu.memory_space<vmem>>, vector<1x32x8xf32>
    %32 = vector.shape_cast %31 : vector<1x32x8xf32> to vector<32x8xf32>
    %33 = vector.shape_cast %30 : vector<32x8xf32> to vector<1x32x8xf32>
    tpu.vector_store %arg11[%c0_24, %c0_25, %c0_26], %33 {strides = array<i32>} : memref<1x32x8xf32, #tpu.memory_space<vmem>>, vector<1x32x8xf32>,
    return
  }
  func.func @transform_0(%arg0: i32, %arg1: i32) -> (i32, i32, i32) {
    %c0_i32 = arith.constant 0 : i32
    %c0_i32_0 = arith.constant 0 : i32
    return %arg0, %arg1, %c0_i32 : i32, i32, i32
  }
  func.func @transform_1(%arg0: i32, %arg1: i32) -> (i32, i32, i32) {
    %c0_i32 = arith.constant 0 : i32
    %c0_i32_0 = arith.constant 0 : i32
    %c0_i32_1 = arith.constant 0 : i32
    return %arg0, %c0_i32, %c0_i32_0 : i32, i32, i32
  }
  func.func @transform_2(%arg0: i32, %arg1: i32) -> (i32, i32) {
    %c0_i32 = arith.constant 0 : i32
    %c0_i32_0 = arith.constant 0 : i32
    %c0_i32_1 = arith.constant 0 : i32
    return %c0_i32, %c0_i32_0 : i32, i32
  }
  func.func @transform_3(%arg0: i32, %arg1: i32) -> (i32, i32) {
    %c0_i32 = arith.constant 0 : i32
    %c0_i32_0 = arith.constant 0 : i32
    %c0_i32_1 = arith.constant 0 : i32
    return %c0_i32, %c0_i32_0 : i32, i32
  }
  func.func @transform_4(%arg0: i32, %arg1: i32) -> (i32, i32) {
    %c0_i32 = arith.constant 0 : i32
    %c0_i32_0 = arith.constant 0 : i32
    %c0_i32_1 = arith.constant 0 : i32
    return %c0_i32, %c0_i32_0 : i32, i32
  }
  func.func @transform_5(%arg0: i32, %arg1: i32) -> (i32, i32) {
    %c0_i32 = arith.constant 0 : i32
    %c0_i32_0 = arith.constant 0 : i32
    %c0_i32_1 = arith.constant 0 : i32
    return %c0_i32, %c0_i32_0 : i32, i32
  }
  func.func @transform_6(%arg0: i32, %arg1: i32) -> (i32, i32) {
    %c0_i32 = arith.constant 0 : i32
    %c0_i32_0 = arith.constant 0 : i32
    %c0_i32_1 = arith.constant 0 : i32
    return %c0_i32, %c0_i32_0 : i32, i32
  }
  func.func @transform_7(%arg0: i32, %arg1: i32) -> (i32, i32) {
    %c0_i32 = arith.constant 0 : i32
    %c0_i32_0 = arith.constant 0 : i32
    %c0_i32_1 = arith.constant 0 : i32
    return %c0_i32, %c0_i32_0 : i32, i32
  }
  func.func @transform_8(%arg0: i32, %arg1: i32) -> (i32, i32, i32) {
    %c0_i32 = arith.constant 0 : i32
    %c0_i32_0 = arith.constant 0 : i32
    return %arg0, %arg1, %c0_i32 : i32, i32, i32
  }
  func.func @transform_9(%arg0: i32, %arg1: i32) -> (i32, i32, i32) {
    %c0_i32 = arith.constant 0 : i32
    %c0_i32_0 = arith.constant 0 : i32
    return %arg0, %arg1, %c0_i32 : i32, i32, i32
  }
}

</mosaic_0001>

<bundles_post_ra>
// kernel: tpu_custom_call.1
= control target key start
LH: loop header
LB: loop body
LE: loop exit
PB: predicated region body
PF: predicated region fallthrough
CT: control target
= control target key end

     0   :  { %15 = vsyncpa [#allocation3], 0  ;;  %s1660_s0 = inlined_call_operand.vmem [shape: f32[2,32,32], index: 0, kind: input, shape index: {}]   ;;  %s1661_s1 = inlined_call_operand.vmem [shape: f32[2,1,128], index: 1, kind: input, shape index: {}]   ;;  %s1662_s2 = inlined_call_operand.hbm [shape: bf16[32,128], index: 2, kind: input, shape index: {}]   ;;  %s1663_s3 = inlined_call_operand.vmem [shape: f32[1,128], index: 3, kind: input, shape index: {}]   ;;  %s1664_s4 = inlined_call_operand.hbm [shape: bf16[128,128], index: 4, kind: input, shape index: {}]   ;;  %s1665_s5 = inlined_call_operand.vmem [shape: f32[1,128], index: 5, kind: input, shape index: {}]   ;;  %s1666_s6 = inlined_call_operand.vmem [shape: bf16[128,8], index: 6, kind: input, shape index: {}]   ;;  %s1667_s7 = inlined_call_operand.vmem [shape: f32[1,8], index: 7, kind: input, shape index: {}]   ;;  %s1668_s8 = inlined_call_operand.hbm [shape: bf16[2,32,128], index: 8, kind: output, shape index: {0}]   ;;  %s1669_s9 = inlined_call_operand.vmem [shape: f32[2,32,8], index: 9, kind: output, shape index: {1}]  }
   0x1   :  { %16 = vsyncpa [#allocation6], 0 }
   0x2   :  { %17 = vsyncpa [#allocation4], 0 }
   0x3   :  { %19 = vsyncpa [#allocation4 + $0x1], 0  ;;  %s1414_s30 = smov 0   ;;  %s1416_s10 = smov 0  }
   0x4   :  { %s1418_s11 = smov 0   ;;  %s1420_s12 = smov 0  }
   0x5   :  { %s1422_s13 = smov 0   ;;  %s1424_s14 = smov 0  }
   0x6 LB: > { %1678 = sst [smem:[#allocation11_spill]] %s1343_s11  ;;  %s978_s15 = sadd.s32 4294967295, %s1355_s14   ;;  %s1355_s14 = sphi %s1424_s14, %s25_s14   ;;  %s1351_s13 = sphi %s1422_s13, %s1696_s13   ;;  %s1347_s12 = sphi %s1420_s12, %s1695_s12   ;;  %s1343_s11 = sphi %s1418_s11, %s1694_s11   ;;  %s1339_s10 = sphi %s1416_s10, %s1698_s10   ;;  %s1335_s30 = sphi %s1414_s30, %s1697_s30  }
   0x7   : > { %1679 = sst [smem:[#allocation12_spill]] %s1351_s13  ;;  %s979_s16 = sadd.s32 4294967294, %s1355_s14  }
   0x8   : > { %s37_s17 = sadd.s32 1, %s1351_s13  ;;  %s226_s18 = sadd.s32 1, %s1343_s11 }
   0x9   : > { %p39_p0 = scmp.ge.s32.totalorder %s37_s17, 2  ;;  %p236_p1 = scmp.ne.s32.totalorder %s1343_s11, %s1339_s10 }
   0xa   : > { %p237_p2 = scmp.eq.s32.totalorder %s978_s15, 1  ;;  %p242_p3 = scmp.ne.s32.totalorder %s1339_s10, %s1335_s30 }
   0xb   : > { %s1700_s17 = smov (%p39_p0, %s37_s17), 0  ;;  %p243_p5 = scmp.eq.s32.totalorder %s979_s16, 1 }
   0xc   : > { %1680 = sst [smem:[#allocation13_spill]] %s1700_s17  ;;  %p1454_p4 = por %p237_p2, %p236_p1 }
   0xd   : > { %s221_s20 = ssub.s32 %s1351_s13, %s1700_s17  ;;  %p980_p6 = scmp.ge.s32.totalorder %s1355_s14, 1 }
   0xe   : > { %s1681_s19 = scalar_select %p1454_p4, 1, 0 }
   0xf   : > { %p224_p7 = scmp.eq.s32.totalorder %s221_s20, 0  ;;  %p1461_p8 = por %p243_p5, %p242_p3 }
  0x10   : > { %p278_p9 = scmp.lt.s32.totalorder %s1355_s14, 3  ;;  %p1473_p11 = scmp.eq.s32.totalorder %s978_s15, 0 }
  0x11   : > { %s1682_s21 = scalar_select %p1461_p8, 1, 0 }
  0x12   : > { %s1467_s22 = scalar_select %p224_p7, %s1343_s11, %s226_s18  }
  0x13   : > { %1683 = sst [smem:[#allocation14_spill]] %s1682_s21  ;;  %p1469_p10 = pnand %p980_p6, %p278_p9 }
  0x14   : > { %1684 = sst [smem:[#allocation15_spill]] %s1467_s22  ;;  %s1357_s25 = smov [#allocation2]  }
  0x15   : > { %s1685_s23 = scalar_select %p1469_p10, 1, 0 }
  0x16   : > { %s1686_s24 = scalar_select %p1473_p11, 1, 0 }
  0x17   : > { %p1125_p12 = pneg %p1469_p10  ;;  %s290_s26 = sshll.u32 %s1357_s25, 4  ;;  %s291_s26 = int_to_ptr.vmem [resolvable:$true] %s290_s26 }
  0x18   : > { %s1358_s28 = smov [#allocation5]   ;;  %s1213_s18 = scalar_lea.hbm %s1662_s2, 256 }
  0x19   : > { %p1481_p13 = pnand %p1473_p11, %p1125_p12  ;;  %s306_s29 = sshll.u32 %s1358_s28, 4  ;;  %s1485_s29 = int_to_ptr.vmem [resolvable:$true] %s306_s29 }
  0x1a   : > { %p1214_p0 = scmp.ne.s32.totalorder %s1662_s2, %s1213_s18  ;;  %p1220_p5 = scmp.lt.u32.totalorder %s1213_s18, %s1662_s2 }
  0x1b   : > { %p1215_p1 = pneg %p1481_p13 }
  0x1d   : > { %p1216_p2 = pnand %p1215_p1, %p1214_p0 }
  0x1f   : > { %p1217_p3 = pneg %p1216_p2 }
  0x21   : > { %p1222_p6 = pnand %p1220_p5, %p1217_p3 }
  0x23   : > { %1225 = shalt.err (!%p1222_p6)
}
  0x24   : > { %s1226_s28 = scalar_lea.vmem %s291_s26, 256  ;;  %p1234_p8 = scmp.lt.s32.totalorder %s291_s26, %s291_s26 }
  0x25   : > { %p1227_p7 = scmp.ne.s32.totalorder %s291_s26, %s1226_s28  ;;  %p1235_p4 = scmp.lt.s32.totalorder %s1226_s28, %s1226_s28 }
  0x27   : > { %p1229_p9 = pnand %p1227_p7, %p1215_p1  ;;  %p1236_p11 = por %p1235_p4, %p1234_p8 }
  0x29   : > { %p1230_p12 = pneg %p1229_p9 }
  0x2b   : > { %p1237_p10 = pnand %p1236_p11, %p1230_p12 }
  0x2d   : > { %1240 = shalt.err (!%p1237_p10)
}
  0x2e   : > { %s1359_s17 = smov 64   ;;  %s1360_s15 = smov 4  }
  0x2f   : > { %1128 = dma.hbm_to_vmem [thread:$0]  (!%p1481_p13), %s1662_s2, 256, %s291_s26, [#allocation3], %s1359_s17, %s1359_s17, %s1360_s15  }
  0x30   : > { %s1241_s25 = scalar_lea.hbm %s1664_s4, 1024 }
  0x31   : > { %p1242_p0 = scmp.ne.s32.totalorder %s1664_s4, %s1241_s25  ;;  %p1248_p10 = scmp.lt.u32.totalorder %s1241_s25, %s1664_s4 }
  0x33   : > { %p1244_p4 = pnand %p1242_p0, %p1215_p1 }
  0x35   : > { %p1245_p8 = pneg %p1244_p4 }
  0x37   : > { %p1250_p11 = pnand %p1248_p10, %p1245_p8 }
  0x39   : > { %1253 = shalt.err (!%p1250_p11)
}
  0x3a   : > { %s1254_s26 = scalar_lea.vmem %s1485_s29, 1024  ;;  %p1262_p6 = scmp.lt.s32.totalorder %s1485_s29, %s1485_s29 }
  0x3b   : > { %p1255_p2 = scmp.ne.s32.totalorder %s1485_s29, %s1254_s26  ;;  %p1263_p7 = scmp.lt.s32.totalorder %s1254_s26, %s1254_s26 }
  0x3d   : > { %p1257_p3 = pnand %p1255_p2, %p1215_p1  ;;  %p1264_p9 = por %p1263_p7, %p1262_p6 }
  0x3f   : > { %p1258_p5 = pneg %p1257_p3 }
  0x41   : > { %p1265_p12 = pnand %p1264_p9, %p1258_p5 }
  0x43   : > { %1268 = shalt.err (!%p1265_p12)
}
  0x44   : > { %1131 = dma.hbm_to_vmem [thread:$0]  (!%p1481_p13), %s1664_s4, 1024, %s1485_s29, [#allocation6], %s1359_s17, %s1359_s17, %s1360_s15  }
  0x45   : > { %p1688_p0 = scmp.ne.s32.totalorder %s1685_s23, 0 }
  0x46   : > { %p1689_p4 = scmp.ne.s32.totalorder (!%p1688_p0), %s1686_s24, 0 }
  0x47   : > { %350 = sbr.rel (%p1688_p0) target bundleno = 755 (0x2f3), region = 52 }
  0x4e   : > { %1322 = dma.done.wait (%p1689_p4), [#allocation3], 256  }
  0x4f   : > { %1324 = vsyncadd (%p1689_p4), [#allocation3], 4294967040 }
  0x50   : > { %1326 = dma.done.wait (%p1689_p4), [#allocation6], 1024  }
  0x51   : > { %1328 = vsyncadd (%p1689_p4), [#allocation6], 4294966272  ;;  %p407_p1 = scmp.lt.s32.totalorder %s1347_s12, 1  ;;  %v1195_v0 = vld [vmem:[#allocation2] sm:$0xff]   ;;  %v1196_v1 = vld [vmem:[#allocation2 + $0x8] sm:$0xff]   ;;  %vm460_vm0 = vcmask 261120  }
  0x52   : > { %1067 = vmatprep.subr.bf16.mxu0 %v1195_v0  ;;  %v1197_v7 = vld [vmem:[#allocation5] sm:$0xff]   ;;  %v1198_v8 = vld [vmem:[#allocation5 + $0x8] sm:$0xff]   ;;  %v1199_v10 = vld [vmem:[#allocation5 + $0x10] sm:$0xff]   ;;  %s392_s16 = sand.u32 1, %s1339_s10   ;;  %p1690_p8 = scmp.ne.s32.totalorder %s1681_s19, 0 }
  0x53   : > { %s1546_s22 = scalar_select %p407_p1, %s1347_s12, 1  ;;  %1068 = vmatpush3.bf16.msra.mxu0 %v1195_v0  ;;  %1075 = vmatprep.subr.bf16.mxu1 %v1197_v7  ;;  %v1200_v11 = vld [vmem:[#allocation5 + $0x18] sm:$0xff]   ;;  %v1201_v12 = vld [vmem:[#allocation5 + $0x20] sm:$0xff]   ;;  %v1202_v13 = vld [vmem:[#allocation5 + $0x28] sm:$0xff]  }
  0x54   : > { %1069 = vmatprep.subr.bf16.mxu0 %v1196_v1  ;;  %1076 = vmatpush3.bf16.msra.mxu1 %v1197_v7  ;;  %v1203_v14 = vld [vmem:[#allocation5 + $0x30] sm:$0xff]   ;;  %v1204_v15 = vld [vmem:[#allocation5 + $0x38] sm:$0xff]   ;;  %v1207_v18 = vld [vmem:[%s1666_s6 + $0x10] sm:$0xff]   ;;  %s987_s18 = sshll.u32 %s392_s16, 4 }
  0x55   : > { %s1025_s23 = sshll.u32 %s1546_s22, 5  ;;  %1077 = vmatprep.subr.bf16.mxu1 %v1198_v8  ;;  %v1205_v16 = vld [vmem:[%s1666_s6] sm:$0xff]   ;;  %v1206_v17 = vld [vmem:[%s1666_s6 + $0x8] sm:$0xff]   ;;  %v1208_v19 = vld [vmem:[%s1666_s6 + $0x18] sm:$0xff]   ;;  %s418_s13 = scalar_lea.vmem %s1661_s1, %s1546_s22 }
  0x56   : > { %s414_s17 = scalar_lea.vmem %s1660_s0, %s1025_s23  ;;  %v1209_v20 = vld [vmem:[%s1666_s6 + $0x20] sm:$0xff]   ;;  %v1210_v21 = vld [vmem:[%s1666_s6 + $0x28] sm:$0xff]   ;;  %s1582_s20 = scalar_lea.vmem [#allocation7], %s987_s18  ;;  %v1211_v42 = vld [vmem:[%s1666_s6 + $0x30] sm:$0xff]  }
  0x57   : > { %v431_v2 = vld [vmem:[%s414_s17] sm:$0xff]  ;;  %v432_v3 = vld [vmem:[%s414_s17 + $0x8] sm:$0xff]  ;;  %v433_v4 = vld [vmem:[%s414_s17 + $0x10] sm:$0xff]  ;;  %1070 = vmatpush3.bf16.msra.mxu0 %v1196_v1  ;;  %s827_s29 = sshll.u32 %s1582_s20, 4  ;;  %s1606_s18 = scalar_lea.sflag [#allocation4], %s392_s16  ;;  %s1596_s29 = int_to_ptr.vmem [resolvable:$true] %s827_s29 }
  0x58   : > { %v435_v5 = vpack.c.bf16 %v432_v3, %v431_v2  ;;  %v434_v6 = vld [vmem:[%s414_s17 + $0x18] sm:$0xff]  ;;  %1078 = vmatpush3.bf16.msra.mxu1 %v1198_v8  ;;  %1095 = vmatprep.subr.bf16.mxu0 %v1205_v16  ;;  %v992_v22 = vld [vmem:[%s1663_s3] ss:$0 sm:$0xff]  ;;  %s1031_s17 = sshll.u32 %s1347_s12, 8  ;;  %s1269_s25 = scalar_lea.vmem %s1596_s29, 256 }
  0x59   : > { %v436_v9 = vpack.c.bf16 %v434_v6, %v433_v4  ;;  %1079 = vmatprep.subr.bf16.mxu1 %v1199_v10  ;;  %v997_v26 = vld [vmem:[%s418_s13] ss:$0 sm:$0xff]  ;;  %v1212_v43 = vld [vmem:[%s1666_s6 + $0x38] sm:$0xff]   ;;  %s1602_s13 = scalar_lea.hbm %s1668_s8, %s1031_s17  ;;  %p1270_p13 = scmp.ne.s32.totalorder %s1596_s29, %s1269_s25 }
  0x5a   : > { %1071 = vmatprep.mubr.msk.bf16.mxu0 %vm460_vm0, %v435_v5  ;;  %v1002_v44 = vld [vmem:[%s1665_s5] ss:$0 sm:$0xff] }
  0x5b   : > { %1072 = vmatmul.mubr.msk.bf16.vlgmr.msra.gmra.mrb[0].mxu0 %vm460_vm0, %v436_v9  ;;  %p1271_p10 = pnand %p1270_p13, %p1690_p8 }
  0x5c   : > { %1080 = vmatpush3.bf16.msra.mxu1 %v1199_v10  ;;  %1096 = vmatpush3.bf16.msra.mxu0 %v1205_v16 }
  0x5d   : > { %1081 = vmatprep.subr.bf16.mxu1 %v1200_v11  ;;  %1097 = vmatprep.subr.bf16.mxu0 %v1206_v17  ;;  %p1272_p11 = pneg %p1271_p10 }
  0x60   : > { %1082 = vmatpush3.bf16.msra.mxu1 %v1200_v11  ;;  %1098 = vmatpush3.bf16.msra.mxu0 %v1206_v17 }
  0x61   : > { %1083 = vmatprep.subr.bf16.mxu1 %v1201_v12  ;;  %1099 = vmatprep.subr.bf16.mxu0 %v1207_v18 }
  0x64   : > { %1084 = vmatpush3.bf16.msra.mxu1 %v1201_v12  ;;  %1100 = vmatpush3.bf16.msra.mxu0 %v1207_v18 }
  0x65   : > { %1085 = vmatprep.subr.bf16.mxu1 %v1202_v13  ;;  %1101 = vmatprep.subr.bf16.mxu0 %v1208_v19 }
  0x68   : > { %1086 = vmatpush3.bf16.msra.mxu1 %v1202_v13  ;;  %1102 = vmatpush3.bf16.msra.mxu0 %v1208_v19 }
  0x69   : > { %1087 = vmatprep.subr.bf16.mxu1 %v1203_v14  ;;  %1103 = vmatprep.subr.bf16.mxu0 %v1209_v20 }
  0x6c   : > { %1088 = vmatpush3.bf16.msra.mxu1 %v1203_v14  ;;  %1104 = vmatpush3.bf16.msra.mxu0 %v1209_v20 }
  0x6d   : > { %1089 = vmatprep.subr.bf16.mxu1 %v1204_v15  ;;  %1105 = vmatprep.subr.bf16.mxu0 %v1210_v21 }
  0x70   : > { %1090 = vmatpush3.bf16.msra.mxu1 %v1204_v15  ;;  %1106 = vmatpush3.bf16.msra.mxu0 %v1210_v21 }
  0x71   : > { %1107 = vmatprep.subr.bf16.mxu0 %v1211_v42 }
  0x74   : > { %1108 = vmatpush3.bf16.msra.mxu0 %v1211_v42 }
  0x75   : > { %1109 = vmatprep.subr.bf16.mxu0 %v1212_v43 }
  0x78   : > { %1110 = vmatpush3.bf16.msra.mxu0 %v1212_v43 }
 0x12e   : > { %v1073_v23 = vpop.f32.mrb[0].mxu0 }
 0x12f   : > { %v510_v24 = vadd.f32 %v1073_v23, %v992_v22  ;;  %v501_v25 = vpop.f32.mrb[1].mxu0 }
 0x130   : > { %v502_v27 = vadd.f32 %v992_v22, %v501_v25  ;;  %v1074_v28 = vpop.f32.mrb[2].mxu0 }
 0x131   : > { %v518_v29 = vmax.f32 %v510_v24, 0.0  ;;  %v513_v30 = vadd.f32 %v1074_v28, %v992_v22  ;;  %v504_v31 = vpop.f32.mrb[3].mxu0 }
 0x132   : > { %v516_v32 = vmax.f32 %v502_v27, 0.0  ;;  %v505_v33 = vadd.f32 %v992_v22, %v504_v31 }
 0x133   : > { %v529_v34 = vadd.f32 %v997_v26, %v518_v29  ;;  %v519_v35 = vmax.f32 %v513_v30, 0.0 }
 0x134   : > { %v527_v36 = vadd.f32 %v997_v26, %v516_v32  ;;  %v517_v37 = vmax.f32 %v505_v33, 0.0 }
 0x135   : > { %v530_v38 = vadd.f32 %v997_v26, %v519_v35 }
 0x136   : > { %v528_v39 = vadd.f32 %v997_v26, %v517_v37 }
 0x137   : > { %v532_v40 = vpack.c.bf16 %v530_v38, %v529_v34 }
 0x138   : > { %v531_v41 = vpack.c.bf16 %v528_v39, %v527_v36 }
 0x139   : > { %1042 = vst [vmem:[%s1582_s20 + $0x8] sm:$0xff] %v532_v40  }
 0x13a   : > { %1036 = vst [vmem:[%s1582_s20] sm:$0xff] %v531_v41   ;;  %1091 = vmatprep.mubr.bf16.mxu1 %v531_v41  ;;  %s1361_s20 = smov [#allocation7]  }
 0x13b   : > { %1092 = vmatmul.mubr.bf16.vlgmr.msra.gmra.mrb[0].mxu1 %v532_v40  ;;  %s1273_s28 = sshll.u32 %s1361_s20, 4  ;;  %s1274_s28 = int_to_ptr.vmem [resolvable:$false] %s1273_s28 }
 0x13c   : > { %s1275_s26 = scalar_lea.vmem %s1274_s28, 512  ;;  %p1276_p2 = scmp.lt.s32.totalorder %s1596_s29, %s1274_s28 }
 0x13d   : > { %p1277_p3 = scmp.lt.s32.totalorder %s1275_s26, %s1269_s25 }
 0x13f   : > { %p1278_p5 = por %p1277_p3, %p1276_p2 }
 0x141   : > { %p1279_p6 = pnand %p1278_p5, %p1272_p11 }
 0x20e   : > { %v1093_v45 = vpop.f32.mrb[0].mxu1 }
 0x20f   : > { %v665_v46 = vadd.f32 %v1093_v45, %v1002_v44  ;;  %v656_v47 = vpop.f32.mrb[1].mxu1 }
 0x210   : > { %v657_v48 = vadd.f32 %v1002_v44, %v656_v47  ;;  %v1094_v49 = vpop.f32.mrb[2].mxu1 }
 0x211   : > { %v668_v50 = vadd.f32 %v1094_v49, %v1002_v44  ;;  %v659_v51 = vpop.f32.mrb[3].mxu1  ;;  %v673_v53 = vmax.f32 %v665_v46, 0.0 }
 0x212   : > { %v660_v52 = vadd.f32 %v1002_v44, %v659_v51  ;;  %v671_v55 = vmax.f32 %v657_v48, 0.0 }
 0x213   : > { %v674_v54 = vmax.f32 %v668_v50, 0.0 }
 0x214   : > { %v672_v56 = vmax.f32 %v660_v52, 0.0 }
 0x215   : > { %v676_v57 = vpack.c.bf16 %v674_v54, %v673_v53 }
 0x216   : > { %v675_v58 = vpack.c.bf16 %v672_v56, %v671_v55 }
 0x218   : > { %1111 = vmatprep.mubr.bf16.mxu0 %v675_v58 }
 0x219   : > { %1112 = vmatmul.mubr.bf16.vlgmr.msra.gmra.mrb[4].mxu0 %v676_v57 }
 0x21a   : > { %1282 = shalt.err (!%p1279_p6)
}
 0x21b   : > { %s1283_s12 = scalar_lea.hbm %s1602_s13, 256  ;;  %s1287_s21 = scalar_lea.hbm %s1668_s8, 512 }
 0x21c   : > { %p1284_p7 = scmp.ne.s32.totalorder %s1602_s13, %s1283_s12  ;;  %p1288_p0 = scmp.lt.u32.totalorder %s1602_s13, %s1668_s8 }
 0x21d   : > { %p1289_p4 = scmp.lt.u32.totalorder %s1287_s21, %s1283_s12  ;;  %p1291_p13 = scmp.lt.u32.totalorder %s1283_s12, %s1602_s13 }
 0x21e   : > { %p1285_p9 = pnand %p1284_p7, %p1690_p8 }
 0x21f   : > { %p1290_p1 = por %p1289_p4, %p1288_p0 }
 0x220   : > { %p1286_p12 = pneg %p1285_p9 }
 0x221   : > { %p1292_p10 = por %p1291_p13, %p1290_p1 }
 0x223   : > { %p1293_p11 = pnand %p1292_p10, %p1286_p12 }
 0x225   : > { %1296 = shalt.err (!%p1293_p11)
}
 0x226   : > { %s1362_s24 = smov 64   ;;  %s1363_s15 = smov 4   ;;  %v1011_v59 = vld [vmem:[%s1667_s7] ss:$0 sm:$0xff]  ;;  %vm797_vm1 = vcmask 64512  }
 0x227   : > { %1123 = dma.vmem_to_hbm [thread:$0]  (%p1690_p8), %s1596_s29, 256, %s1602_s13, %s1606_s18, %s1362_s24, %s1362_s24, %s1363_s15  }
 0x228   : > { %s428_s12 = scalar_lea.vmem %s1669_s9, %s1025_s23 }
 0x2ec   : > { %v1113_v60 = vpop.f32.mrb[4].mxu0 }
 0x2ed   : > { %v791_v61 = vadd.f32 %v1113_v60, %v1011_v59  ;;  %v782_v62 = vpop.f32.mrb[5].mxu0 }
 0x2ee   : > { %v783_v63 = vadd.f32 %v1011_v59, %v782_v62  ;;  %v1114_v0 = vpop.f32.mrb[6].mxu0 }
 0x2ef   : > { %800 = vst.msk [vmem:[%s428_s12 + $0x10] sm:$0xff] %vm797_vm1, %v791_v61  ;;  %v794_v1 = vadd.f32 %v1114_v0, %v1011_v59  ;;  %v785_v2 = vpop.f32.mrb[7].mxu0 }
 0x2f0   : > { %798 = vst.msk [vmem:[%s428_s12] sm:$0xff] %vm797_vm1, %v783_v63  ;;  %v786_v3 = vadd.f32 %v1011_v59, %v785_v2 }
 0x2f1   : > { %801 = vst.msk [vmem:[%s428_s12 + $0x18] sm:$0xff] %vm797_vm1, %v794_v1 }
 0x2f2   : > { %799 = vst.msk [vmem:[%s428_s12 + $0x8] sm:$0xff] %vm797_vm1, %v786_v3 }
 0x2f3 PF: > { %s1691_s19 = sld [smem:[#allocation14_spill]]  ;;  %p1140_p8 = scmp.ge.s32.totalorder %s1355_s14, 2 }
 0x2f4   : > { %s846_s22 = sand.u32 1, %s1335_s30  }
 0x2f5   : > { %s847_s23 = scalar_lea.sflag [#allocation4], %s846_s22 }
 0x2f9   : > { %p1692_p2 = scmp.ne.s32.totalorder %s1691_s19, 0 }
 0x2fb   : > { %p1133_p3 = pnand %p1140_p8, %p1692_p2 }
 0x2fd   : > { %1330 = dma.done.wait (!%p1133_p3), %s847_s23, 256  }
 0x2fe   : > { %1332 = vsyncadd (!%p1133_p3), %s847_s23, 4294967040  ;;  %s25_s14 = sadd.s32 1, %s1355_s14   ;;  %s1693_s29 = sld [smem:[#allocation11_spill]] }
 0x2ff   : > { %p22_p5 = scmp.ge.s32.totalorder %s25_s14, 4   ;;  %s1694_s11 = sld [smem:[#allocation15_spill]] }
 0x300   : > { %s1695_s12 = sld [smem:[#allocation12_spill]]  ;;  %s1696_s13 = sld [smem:[#allocation13_spill]] }
 0x301   : > { %s1697_s30 = smov %s1339_s10  ;;  %24 = sbr.rel (!%p22_p5) target bundleno = 6 (0x6), region = 111 }
 0x304   : > { %s1698_s10 = smov %s1693_s29 }
 0x308   :  { %864 = vsyncpa [#allocation3], 1 }
 0x309   :  { %866 = vsyncpa [#allocation3 + $0x1], 1 }
 0x30a   :  { %867 = vsyncpa [#allocation6], 1 }
 0x30b   :  { %868 = vsyncpa [#allocation4], 1 }
 0x30c   :  { %870 = vsyncpa [#allocation4 + $0x1], 1 }

</bundles_post_ra>
